<compile_context>
chip_gen: v6e
topology: v6e:2x2x1
jax: 0.10.0
libtpu: 0.0.40
codegen_flags: <defaults>
</compile_context>

<pallas_src>
import functools

import numpy as np
import jax
import jax.numpy as jnp
from jax import lax
from jax.experimental import pallas as pl
from jax.experimental.pallas import tpu as pltpu


def _make_tap_masks(Hc, Wc, KH, KW, pad, dtype):
    """(KH*KW, 1, Hc*Wc) masks: 1 where the tap's input pixel is inside the image,
    0 where it falls into the zero padding / wraps around after the flat roll."""
    rows = np.arange(Hc).reshape(Hc, 1)
    cols = np.arange(Wc).reshape(1, Wc)
    masks = []
    for kh in range(KH):
        for kw in range(KW):
            dh, dw = kh - pad, kw - pad
            m = ((rows + dh >= 0) & (rows + dh < Hc) &
                 (cols + dw >= 0) & (cols + dw < Wc))
            masks.append(m.reshape(1, Hc * Wc))
    return jnp.asarray(np.stack(masks, axis=0).astype(np.float32), dtype=dtype)


def _double_conv_kernel(x_ref, w1_ref, b1_ref, m1_ref, w2_ref, b2_ref, m2_ref,
                        o_ref, *, KH, KW, p1, p2, H, W, Ho1, Wo1, Ho2, Wo2, slope):
    """Fused conv1 + LeakyReLU + conv2 + LeakyReLU for one batch element.

    x_ref : (Cin, H*W)              lane-flat NCHW input
    w*_ref: (KH*KW, Co, Ci)         per-tap weights
    b*_ref: (Co, 1)                 f32 bias
    m*_ref: (KH*KW, 1, grid)        per-tap boundary/padding masks
    o_ref : (Cout, Ho2*Wo2)         lane-dense output
    """

    def leaky(y):
        if 0.0 <= slope <= 1.0:
            return jnp.maximum(y, slope * y)        # single vmax on the VPU
        return jnp.where(y >= 0, y, slope * y)

    def conv_lrelu(x_flat, w_ref, b_ref, m_ref, Hc, Wc, pad):
        # LeakyReLU(conv2d(x)) evaluated on the full Hc x Wc grid, lane-flat.
        size = Hc * Wc
        acc = None
        for kh in range(KH):
            for kw in range(KW):
                t = kh * KW + kw
                delta = (kh - pad) * Wc + (kw - pad)     # flat offset of this tap
                tap = x_flat
                if delta % size != 0:
                    # out[i] = x[i + delta]  (lane rotate on the XLU, overlaps MXU)
                    tap = pltpu.roll(tap, shift=(-delta) % size, axis=1)
                if not (kh == pad and kw == pad):
                    tap = tap * m_ref[t]                 # zero wrapped / padded pixels
                part = jnp.dot(w_ref[t], tap,
                               preferred_element_type=jnp.float32)  # (Co, size) f32
                acc = part if acc is None else acc + part
        return leaky(acc + b_ref[...])

    x = x_ref[...]                                       # (Cin, H*W)
    mm_dtype = x.dtype

    # conv1 (+LeakyReLU); intermediate stays in vregs/VMEM (never written to HBM).
    y1 = conv_lrelu(x, w1_ref, b1_ref, m1_ref, H, W, p1)             # (Cmid, H*W) f32
    if (Ho1, Wo1) != (H, W):
        # Only hit when conv1 padding < (k-1)//2 ('valid'-ish): crop the window.
        y1 = y1.reshape(-1, H, W)[:, :Ho1, :Wo1].reshape(-1, Ho1 * Wo1)

    # conv2 (+LeakyReLU) with 'same' padding p2 on the Ho1 x Wo1 grid.
    y2 = conv_lrelu(y1.astype(mm_dtype), w2_ref, b2_ref, m2_ref, Ho1, Wo1, p2)
    if (Ho2, Wo2) != (Ho1, Wo1):
        y2 = y2.reshape(-1, Ho1, Wo1)[:, :Ho2, :Wo2].reshape(-1, Ho2 * Wo2)

    o_ref[...] = y2.astype(o_ref.dtype)                  # lane-dense store


def double_conv_forward(x_nchw, params, *, kernel_size, padding, stride, leaky_slope):
    """Equivalent of DoubleConv.forward. x_nchw: (N, Cin, H, W) -> (N, Cout, Ho, Wo)."""
    (w1, b1), (w2, b2) = params
    N, Cin, H, W = x_nchw.shape
    Cmid = w1.shape[0]
    Cout = w2.shape[0]
    KH = KW = kernel_size
    p1 = padding
    p2 = (kernel_size - 1) // 2

    if stride != 1:
        # TODO(synk): handle stride>1 by subsampling at the DMA/ref level.
        raise NotImplementedError("fused DoubleConv kernel currently supports stride=1")
    if p1 > (KH - 1) // 2:
        # TODO(synk): padding > 'same' needs a compute grid larger than H x W.
        raise NotImplementedError("padding > (kernel_size - 1)//2 not supported")

    Ho1 = H + 2 * p1 - KH + 1
    Wo1 = W + 2 * p1 - KW + 1
    Ho2 = Ho1 + 2 * p2 - KH + 1
    Wo2 = Wo1 + 2 * p2 - KW + 1

    mm_dtype = x_nchw.dtype  # bf16 inputs -> bf16 MXU operands; f32 stays f32.

    # Per-tap weights: OIHW -> (KH, KW, O, I) -> (KH*KW, O, I); tap order (kh, kw)
    # matches the kernel loop. Bias kept in f32 for the accumulator add.
    w1_t = jnp.transpose(w1, (2, 3, 0, 1)).reshape(KH * KW, Cmid, Cin).astype(mm_dtype)
    w2_t = jnp.transpose(w2, (2, 3, 0, 1)).reshape(KH * KW, Cout, Cmid).astype(mm_dtype)
    b1_c = b1.reshape(Cmid, 1).astype(jnp.float32)
    b2_c = b2.reshape(Cout, 1).astype(jnp.float32)

    # Trace-time boundary/padding masks (tiny, stay resident in VMEM).
    m1 = _make_tap_masks(H, W, KH, KW, p1, mm_dtype)
    m2 = _make_tap_masks(Ho1, Wo1, KH, KW, p2, mm_dtype)

    x_flat = x_nchw.reshape(N, Cin, H * W)   # free contiguous view, lane-dense DMA

    kernel = functools.partial(
        _double_conv_kernel, KH=KH, KW=KW, p1=p1, p2=p2, H=H, W=W,
        Ho1=Ho1, Wo1=Wo1, Ho2=Ho2, Wo2=Wo2, slope=float(leaky_slope))

    out_flat = pl.pallas_call(
        kernel,
        out_shape=jax.ShapeDtypeStruct((N, Cout, Ho2 * Wo2), x_nchw.dtype),
        grid_spec=pltpu.PrefetchScalarGridSpec(
            num_scalar_prefetch=0,
            grid=(N,),
            in_specs=[
                pl.BlockSpec((None, Cin, H * W), lambda n: (n, 0, 0)),
                pl.BlockSpec((KH * KW, Cmid, Cin), lambda n: (0, 0, 0)),
                pl.BlockSpec((Cmid, 1), lambda n: (0, 0)),
                pl.BlockSpec((KH * KW, 1, H * W), lambda n: (0, 0, 0)),
                pl.BlockSpec((KH * KW, Cout, Cmid), lambda n: (0, 0, 0)),
                pl.BlockSpec((Cout, 1), lambda n: (0, 0)),
                pl.BlockSpec((KH * KW, 1, Ho1 * Wo1), lambda n: (0, 0, 0)),
            ],
            out_specs=pl.BlockSpec((None, Cout, Ho2 * Wo2), lambda n: (n, 0, 0)),
        ),
        compiler_params=pltpu.CompilerParams(dimension_semantics=("parallel",)),
    )(x_flat, w1_t, b1_c, m1, w2_t, b2_c, m2)

    # Contiguous reshape only (no transpose / extra HBM pass): output is NCHW.
    return out_flat.reshape(N, Cout, Ho2, Wo2)


def init_conv_params(key, in_ch, out_ch, k):
    """Deterministic init matching PyTorch Conv2d default (uniform +/- 1/sqrt(fan_in))."""
    kw, kb = jax.random.split(key)
    fan_in = in_ch * k * k
    bound = 1.0 / jnp.sqrt(fan_in)
    w = jax.random.uniform(kw, (out_ch, in_ch, k, k), jnp.float32, -bound, bound)  # OIHW
    b = jax.random.uniform(kb, (out_ch,), jnp.float32, -bound, bound)
    return w, b


def _reference_double_conv(x, params, *, kernel_size, padding, stride, leaky_slope):
    (w1, b1), (w2, b2) = params
    dn = ("NCHW", "OIHW", "NCHW")

    def conv(x, w, b, s, p):
        y = lax.conv_general_dilated(x, w, window_strides=(s, s),
                                     padding=((p, p), (p, p)), dimension_numbers=dn)
        y = y + b.reshape(1, -1, 1, 1)
        return jnp.where(y >= 0, y, leaky_slope * y)

    y = conv(x, w1, b1, stride, padding)
    return conv(y, w2, b2, 1, (kernel_size - 1) // 2)


if __name__ == "__main__":
    # DoubleConv(in_channels=4, out_channels=8, kernel_size=3, padding=1,
    #            stride=1, leaky_slope=0.1)
    in_ch, out_ch, ksize, pad, stride, slope = 4, 8, 3, 1, 1, 0.1
    N, H, W = 2, 16, 16

    key = jax.random.PRNGKey(0)
    kx, k1, k2 = jax.random.split(key, 3)
    x = jax.random.normal(kx, (N, in_ch, H, W), jnp.float32)
    params = (init_conv_params(k1, in_ch, out_ch, ksize),
              init_conv_params(k2, out_ch, out_ch, ksize))

    out = double_conv_forward(x, params, kernel_size=ksize, padding=pad,
                              stride=stride, leaky_slope=slope)
    out = jax.block_until_ready(out)

    ref = _reference_double_conv(x, params, kernel_size=ksize, padding=pad,
                                 stride=stride, leaky_slope=slope)
    assert out.shape == (N, out_ch, H, W), out.shape
    assert jnp.allclose(out, ref, atol=1e-4, rtol=1e-4), float(jnp.max(jnp.abs(out - ref)))

    print("KERNEL_OK")
</pallas_src>

<mosaic_0001>
module attributes {stable_mosaic.version = 11 : i64} {
  func.func @_double_conv_kernel(%arg0: i32, %arg1: memref<1x4x256xf32, #tpu.memory_space<vmem>>, %arg2: memref<9x8x4xf32, #tpu.memory_space<vmem>>, %arg3: memref<8x1xf32, #tpu.memory_space<vmem>>, %arg4: memref<9x1x256xf32, #tpu.memory_space<vmem>>, %arg5: memref<9x8x8xf32, #tpu.memory_space<vmem>>, %arg6: memref<8x1xf32, #tpu.memory_space<vmem>>, %arg7: memref<9x1x256xf32, #tpu.memory_space<vmem>>, %arg8: memref<1x8x256xf32, #tpu.memory_space<vmem>>) attributes {dimension_semantics = [#tpu.dimension_semantics<parallel>], iteration_bounds = array<i64: 2>, scalar_prefetch = 0 : i64, scratch_operands = 0 : i64, tpu.core_type = #tpu.core_type<tc>, window_params = [{transform_indices = @transform_0, window_bounds = array<i64: 1, 4, 256>}, {pipeline_mode = #tpu.pipeline_mode<synchronous>, transform_indices = @transform_1, window_bounds = array<i64: 9, 8, 4>}, {pipeline_mode = #tpu.pipeline_mode<synchronous>, transform_indices = @transform_2, window_bounds = array<i64: 8, 1>}, {pipeline_mode = #tpu.pipeline_mode<synchronous>, transform_indices = @transform_3, window_bounds = array<i64: 9, 1, 256>}, {pipeline_mode = #tpu.pipeline_mode<synchronous>, transform_indices = @transform_4, window_bounds = array<i64: 9, 8, 8>}, {pipeline_mode = #tpu.pipeline_mode<synchronous>, transform_indices = @transform_5, window_bounds = array<i64: 8, 1>}, {pipeline_mode = #tpu.pipeline_mode<synchronous>, transform_indices = @transform_6, window_bounds = array<i64: 9, 1, 256>}, {transform_indices = @transform_7, window_bounds = array<i64: 1, 8, 256>}]} {
    %c0 = arith.constant 0 : index
    %c0_0 = arith.constant 0 : index
    %c0_1 = arith.constant 0 : index
    %0 = vector.load %arg1[%c0, %c0_0, %c0_1] : memref<1x4x256xf32, #tpu.memory_space<vmem>>, vector<1x4x256xf32>
    %1 = vector.shape_cast %0 : vector<1x4x256xf32> to vector<4x256xf32>
    %c17_i32 = arith.constant 17 : i32
    %2 = tpu.dynamic_rotate %1 by %c17_i32 dim 1 : vector<4x256xf32>, i32 -> vector<4x256xf32>
    %c0_2 = arith.constant 0 : index
    %c0_3 = arith.constant 0 : index
    %c0_4 = arith.constant 0 : index
    %3 = vector.load %arg4[%c0_2, %c0_3, %c0_4] : memref<9x1x256xf32, #tpu.memory_space<vmem>>, vector<1x1x256xf32>
    %4 = vector.shape_cast %3 : vector<1x1x256xf32> to vector<1x256xf32>
    %5 = vector.broadcast %4 : vector<1x256xf32> to vector<4x256xf32>
    %6 = arith.mulf %2, %5 : vector<4x256xf32>
    %c0_5 = arith.constant 0 : index
    %c0_6 = arith.constant 0 : index
    %c0_7 = arith.constant 0 : index
    %7 = vector.load %arg2[%c0_5, %c0_6, %c0_7] : memref<9x8x4xf32, #tpu.memory_space<vmem>>, vector<1x8x4xf32>
    %8 = vector.shape_cast %7 : vector<1x8x4xf32> to vector<8x4xf32>
    %cst = arith.constant dense<0.000000e+00> : vector<8x256xf32>
    %9 = tpu.matmul %8, %6, %cst {dimension_numbers = #tpu.dot_dimension_numbers<[1], [0], [0], [1], [0, 0, 1, 1], [], []>} : vector<8x4xf32>, vector<4x256xf32>, vector<8x256xf32> -> vector<8x256xf32>
    %c16_i32 = arith.constant 16 : i32
    %10 = tpu.dynamic_rotate %1 by %c16_i32 dim 1 : vector<4x256xf32>, i32 -> vector<4x256xf32>
    %c1 = arith.constant 1 : index
    %c0_8 = arith.constant 0 : index
    %c0_9 = arith.constant 0 : index
    %11 = vector.load %arg4[%c1, %c0_8, %c0_9] : memref<9x1x256xf32, #tpu.memory_space<vmem>>, vector<1x1x256xf32>
    %12 = vector.shape_cast %11 : vector<1x1x256xf32> to vector<1x256xf32>
    %13 = vector.broadcast %12 : vector<1x256xf32> to vector<4x256xf32>
    %14 = arith.mulf %10, %13 : vector<4x256xf32>
    %c1_10 = arith.constant 1 : index
    %c0_11 = arith.constant 0 : index
    %c0_12 = arith.constant 0 : index
    %15 = vector.load %arg2[%c1_10, %c0_11, %c0_12] : memref<9x8x4xf32, #tpu.memory_space<vmem>>, vector<1x8x4xf32>
    %16 = vector.shape_cast %15 : vector<1x8x4xf32> to vector<8x4xf32>
    %cst_13 = arith.constant dense<0.000000e+00> : vector<8x256xf32>
    %17 = tpu.matmul %16, %14, %cst_13 {dimension_numbers = #tpu.dot_dimension_numbers<[1], [0], [0], [1], [0, 0, 1, 1], [], []>} : vector<8x4xf32>, vector<4x256xf32>, vector<8x256xf32> -> vector<8x256xf32>
    %18 = arith.addf %9, %17 : vector<8x256xf32>
    %c15_i32 = arith.constant 15 : i32
    %19 = tpu.dynamic_rotate %1 by %c15_i32 dim 1 : vector<4x256xf32>, i32 -> vector<4x256xf32>
    %c2 = arith.constant 2 : index
    %c0_14 = arith.constant 0 : index
    %c0_15 = arith.constant 0 : index
    %20 = vector.load %arg4[%c2, %c0_14, %c0_15] : memref<9x1x256xf32, #tpu.memory_space<vmem>>, vector<1x1x256xf32>
    %21 = vector.shape_cast %20 : vector<1x1x256xf32> to vector<1x256xf32>
    %22 = vector.broadcast %21 : vector<1x256xf32> to vector<4x256xf32>
    %23 = arith.mulf %19, %22 : vector<4x256xf32>
    %c2_16 = arith.constant 2 : index
    %c0_17 = arith.constant 0 : index
    %c0_18 = arith.constant 0 : index
    %24 = vector.load %arg2[%c2_16, %c0_17, %c0_18] : memref<9x8x4xf32, #tpu.memory_space<vmem>>, vector<1x8x4xf32>
    %25 = vector.shape_cast %24 : vector<1x8x4xf32> to vector<8x4xf32>
    %cst_19 = arith.constant dense<0.000000e+00> : vector<8x256xf32>
    %26 = tpu.matmul %25, %23, %cst_19 {dimension_numbers = #tpu.dot_dimension_numbers<[1], [0], [0], [1], [0, 0, 1, 1], [], []>} : vector<8x4xf32>, vector<4x256xf32>, vector<8x256xf32> -> vector<8x256xf32>
    %27 = arith.addf %18, %26 : vector<8x256xf32>
    %c1_i32 = arith.constant 1 : i32
    %28 = tpu.dynamic_rotate %1 by %c1_i32 dim 1 : vector<4x256xf32>, i32 -> vector<4x256xf32>
    %c3 = arith.constant 3 : index
    %c0_20 = arith.constant 0 : index
    %c0_21 = arith.constant 0 : index
    %29 = vector.load %arg4[%c3, %c0_20, %c0_21] : memref<9x1x256xf32, #tpu.memory_space<vmem>>, vector<1x1x256xf32>
    %30 = vector.shape_cast %29 : vector<1x1x256xf32> to vector<1x256xf32>
    %31 = vector.broadcast %30 : vector<1x256xf32> to vector<4x256xf32>
    %32 = arith.mulf %28, %31 : vector<4x256xf32>
    %c3_22 = arith.constant 3 : index
    %c0_23 = arith.constant 0 : index
    %c0_24 = arith.constant 0 : index
    %33 = vector.load %arg2[%c3_22, %c0_23, %c0_24] : memref<9x8x4xf32, #tpu.memory_space<vmem>>, vector<1x8x4xf32>
    %34 = vector.shape_cast %33 : vector<1x8x4xf32> to vector<8x4xf32>
    %cst_25 = arith.constant dense<0.000000e+00> : vector<8x256xf32>
    %35 = tpu.matmul %34, %32, %cst_25 {dimension_numbers = #tpu.dot_dimension_numbers<[1], [0], [0], [1], [0, 0, 1, 1], [], []>} : vector<8x4xf32>, vector<4x256xf32>, vector<8x256xf32> -> vector<8x256xf32>
    %36 = arith.addf %27, %35 : vector<8x256xf32>
    %c4 = arith.constant 4 : index
    %c0_26 = arith.constant 0 : index
    %c0_27 = arith.constant 0 : index
    %37 = vector.load %arg2[%c4, %c0_26, %c0_27] : memref<9x8x4xf32, #tpu.memory_space<vmem>>, vector<1x8x4xf32>
    %38 = vector.shape_cast %37 : vector<1x8x4xf32> to vector<8x4xf32>
    %cst_28 = arith.constant dense<0.000000e+00> : vector<8x256xf32>
    %39 = tpu.matmul %38, %1, %cst_28 {dimension_numbers = #tpu.dot_dimension_numbers<[1], [0], [0], [1], [0, 0, 1, 1], [], []>} : vector<8x4xf32>, vector<4x256xf32>, vector<8x256xf32> -> vector<8x256xf32>
    %40 = arith.addf %36, %39 : vector<8x256xf32>
    %c255_i32 = arith.constant 255 : i32
    %41 = tpu.dynamic_rotate %1 by %c255_i32 dim 1 : vector<4x256xf32>, i32 -> vector<4x256xf32>
    %c5 = arith.constant 5 : index
    %c0_29 = arith.constant 0 : index
    %c0_30 = arith.constant 0 : index
    %42 = vector.load %arg4[%c5, %c0_29, %c0_30] : memref<9x1x256xf32, #tpu.memory_space<vmem>>, vector<1x1x256xf32>
    %43 = vector.shape_cast %42 : vector<1x1x256xf32> to vector<1x256xf32>
    %44 = vector.broadcast %43 : vector<1x256xf32> to vector<4x256xf32>
    %45 = arith.mulf %41, %44 : vector<4x256xf32>
    %c5_31 = arith.constant 5 : index
    %c0_32 = arith.constant 0 : index
    %c0_33 = arith.constant 0 : index
    %46 = vector.load %arg2[%c5_31, %c0_32, %c0_33] : memref<9x8x4xf32, #tpu.memory_space<vmem>>, vector<1x8x4xf32>
    %47 = vector.shape_cast %46 : vector<1x8x4xf32> to vector<8x4xf32>
    %cst_34 = arith.constant dense<0.000000e+00> : vector<8x256xf32>
    %48 = tpu.matmul %47, %45, %cst_34 {dimension_numbers = #tpu.dot_dimension_numbers<[1], [0], [0], [1], [0, 0, 1, 1], [], []>} : vector<8x4xf32>, vector<4x256xf32>, vector<8x256xf32> -> vector<8x256xf32>
    %49 = arith.addf %40, %48 : vector<8x256xf32>
    %c241_i32 = arith.constant 241 : i32
    %50 = tpu.dynamic_rotate %1 by %c241_i32 dim 1 : vector<4x256xf32>, i32 -> vector<4x256xf32>
    %c6 = arith.constant 6 : index
    %c0_35 = arith.constant 0 : index
    %c0_36 = arith.constant 0 : index
    %51 = vector.load %arg4[%c6, %c0_35, %c0_36] : memref<9x1x256xf32, #tpu.memory_space<vmem>>, vector<1x1x256xf32>
    %52 = vector.shape_cast %51 : vector<1x1x256xf32> to vector<1x256xf32>
    %53 = vector.broadcast %52 : vector<1x256xf32> to vector<4x256xf32>
    %54 = arith.mulf %50, %53 : vector<4x256xf32>
    %c6_37 = arith.constant 6 : index
    %c0_38 = arith.constant 0 : index
    %c0_39 = arith.constant 0 : index
    %55 = vector.load %arg2[%c6_37, %c0_38, %c0_39] : memref<9x8x4xf32, #tpu.memory_space<vmem>>, vector<1x8x4xf32>
    %56 = vector.shape_cast %55 : vector<1x8x4xf32> to vector<8x4xf32>
    %cst_40 = arith.constant dense<0.000000e+00> : vector<8x256xf32>
    %57 = tpu.matmul %56, %54, %cst_40 {dimension_numbers = #tpu.dot_dimension_numbers<[1], [0], [0], [1], [0, 0, 1, 1], [], []>} : vector<8x4xf32>, vector<4x256xf32>, vector<8x256xf32> -> vector<8x256xf32>
    %58 = arith.addf %49, %57 : vector<8x256xf32>
    %c240_i32 = arith.constant 240 : i32
    %59 = tpu.dynamic_rotate %1 by %c240_i32 dim 1 : vector<4x256xf32>, i32 -> vector<4x256xf32>
    %c7 = arith.constant 7 : index
    %c0_41 = arith.constant 0 : index
    %c0_42 = arith.constant 0 : index
    %60 = vector.load %arg4[%c7, %c0_41, %c0_42] : memref<9x1x256xf32, #tpu.memory_space<vmem>>, vector<1x1x256xf32>
    %61 = vector.shape_cast %60 : vector<1x1x256xf32> to vector<1x256xf32>
    %62 = vector.broadcast %61 : vector<1x256xf32> to vector<4x256xf32>
    %63 = arith.mulf %59, %62 : vector<4x256xf32>
    %c7_43 = arith.constant 7 : index
    %c0_44 = arith.constant 0 : index
    %c0_45 = arith.constant 0 : index
    %64 = vector.load %arg2[%c7_43, %c0_44, %c0_45] : memref<9x8x4xf32, #tpu.memory_space<vmem>>, vector<1x8x4xf32>
    %65 = vector.shape_cast %64 : vector<1x8x4xf32> to vector<8x4xf32>
    %cst_46 = arith.constant dense<0.000000e+00> : vector<8x256xf32>
    %66 = tpu.matmul %65, %63, %cst_46 {dimension_numbers = #tpu.dot_dimension_numbers<[1], [0], [0], [1], [0, 0, 1, 1], [], []>} : vector<8x4xf32>, vector<4x256xf32>, vector<8x256xf32> -> vector<8x256xf32>
    %67 = arith.addf %58, %66 : vector<8x256xf32>
    %c239_i32 = arith.constant 239 : i32
    %68 = tpu.dynamic_rotate %1 by %c239_i32 dim 1 : vector<4x256xf32>, i32 -> vector<4x256xf32>
    %c8 = arith.constant 8 : index
    %c0_47 = arith.constant 0 : index
    %c0_48 = arith.constant 0 : index
    %69 = vector.load %arg4[%c8, %c0_47, %c0_48] : memref<9x1x256xf32, #tpu.memory_space<vmem>>, vector<1x1x256xf32>
    %70 = vector.shape_cast %69 : vector<1x1x256xf32> to vector<1x256xf32>
    %71 = vector.broadcast %70 : vector<1x256xf32> to vector<4x256xf32>
    %72 = arith.mulf %68, %71 : vector<4x256xf32>
    %c8_49 = arith.constant 8 : index
    %c0_50 = arith.constant 0 : index
    %c0_51 = arith.constant 0 : index
    %73 = vector.load %arg2[%c8_49, %c0_50, %c0_51] : memref<9x8x4xf32, #tpu.memory_space<vmem>>, vector<1x8x4xf32>
    %74 = vector.shape_cast %73 : vector<1x8x4xf32> to vector<8x4xf32>
    %cst_52 = arith.constant dense<0.000000e+00> : vector<8x256xf32>
    %75 = tpu.matmul %74, %72, %cst_52 {dimension_numbers = #tpu.dot_dimension_numbers<[1], [0], [0], [1], [0, 0, 1, 1], [], []>} : vector<8x4xf32>, vector<4x256xf32>, vector<8x256xf32> -> vector<8x256xf32>
    %76 = arith.addf %67, %75 : vector<8x256xf32>
    %c0_53 = arith.constant 0 : index
    %c0_54 = arith.constant 0 : index
    %77 = vector.load %arg3[%c0_53, %c0_54] : memref<8x1xf32, #tpu.memory_space<vmem>>, vector<8x1xf32>
    %78 = vector.broadcast %77 : vector<8x1xf32> to vector<8x256xf32>
    %79 = arith.addf %76, %78 : vector<8x256xf32>
    %cst_55 = arith.constant 1.000000e-01 : f32
    %80 = vector.broadcast %cst_55 : f32 to vector<8x256xf32>
    %81 = arith.mulf %80, %79 : vector<8x256xf32>
    %82 = arith.maximumf %79, %81 : vector<8x256xf32>
    %c17_i32_56 = arith.constant 17 : i32
    %83 = tpu.dynamic_rotate %82 by %c17_i32_56 dim 1 : vector<8x256xf32>, i32 -> vector<8x256xf32>
    %c0_57 = arith.constant 0 : index
    %c0_58 = arith.constant 0 : index
    %c0_59 = arith.constant 0 : index
    %84 = vector.load %arg7[%c0_57, %c0_58, %c0_59] : memref<9x1x256xf32, #tpu.memory_space<vmem>>, vector<1x1x256xf32>
    %85 = vector.shape_cast %84 : vector<1x1x256xf32> to vector<1x256xf32>
    %86 = vector.broadcast %85 : vector<1x256xf32> to vector<8x256xf32>
    %87 = arith.mulf %83, %86 : vector<8x256xf32>
    %c0_60 = arith.constant 0 : index
    %c0_61 = arith.constant 0 : index
    %c0_62 = arith.constant 0 : index
    %88 = vector.load %arg5[%c0_60, %c0_61, %c0_62] : memref<9x8x8xf32, #tpu.memory_space<vmem>>, vector<1x8x8xf32>
    %89 = vector.shape_cast %88 : vector<1x8x8xf32> to vector<8x8xf32>
    %cst_63 = arith.constant dense<0.000000e+00> : vector<8x256xf32>
    %90 = tpu.matmul %89, %87, %cst_63 {dimension_numbers = #tpu.dot_dimension_numbers<[1], [0], [0], [1], [0, 0, 1, 1], [], []>} : vector<8x8xf32>, vector<8x256xf32>, vector<8x256xf32> -> vector<8x256xf32>
    %c16_i32_64 = arith.constant 16 : i32
    %91 = tpu.dynamic_rotate %82 by %c16_i32_64 dim 1 : vector<8x256xf32>, i32 -> vector<8x256xf32>
    %c1_65 = arith.constant 1 : index
    %c0_66 = arith.constant 0 : index
    %c0_67 = arith.constant 0 : index
    %92 = vector.load %arg7[%c1_65, %c0_66, %c0_67] : memref<9x1x256xf32, #tpu.memory_space<vmem>>, vector<1x1x256xf32>
    %93 = vector.shape_cast %92 : vector<1x1x256xf32> to vector<1x256xf32>
    %94 = vector.broadcast %93 : vector<1x256xf32> to vector<8x256xf32>
    %95 = arith.mulf %91, %94 : vector<8x256xf32>
    %c1_68 = arith.constant 1 : index
    %c0_69 = arith.constant 0 : index
    %c0_70 = arith.constant 0 : index
    %96 = vector.load %arg5[%c1_68, %c0_69, %c0_70] : memref<9x8x8xf32, #tpu.memory_space<vmem>>, vector<1x8x8xf32>
    %97 = vector.shape_cast %96 : vector<1x8x8xf32> to vector<8x8xf32>
    %cst_71 = arith.constant dense<0.000000e+00> : vector<8x256xf32>
    %98 = tpu.matmul %97, %95, %cst_71 {dimension_numbers = #tpu.dot_dimension_numbers<[1], [0], [0], [1], [0, 0, 1, 1], [], []>} : vector<8x8xf32>, vector<8x256xf32>, vector<8x256xf32> -> vector<8x256xf32>
    %99 = arith.addf %90, %98 : vector<8x256xf32>
    %c15_i32_72 = arith.constant 15 : i32
    %100 = tpu.dynamic_rotate %82 by %c15_i32_72 dim 1 : vector<8x256xf32>, i32 -> vector<8x256xf32>
    %c2_73 = arith.constant 2 : index
    %c0_74 = arith.constant 0 : index
    %c0_75 = arith.constant 0 : index
    %101 = vector.load %arg7[%c2_73, %c0_74, %c0_75] : memref<9x1x256xf32, #tpu.memory_space<vmem>>, vector<1x1x256xf32>
    %102 = vector.shape_cast %101 : vector<1x1x256xf32> to vector<1x256xf32>
    %103 = vector.broadcast %102 : vector<1x256xf32> to vector<8x256xf32>
    %104 = arith.mulf %100, %103 : vector<8x256xf32>
    %c2_76 = arith.constant 2 : index
    %c0_77 = arith.constant 0 : index
    %c0_78 = arith.constant 0 : index
    %105 = vector.load %arg5[%c2_76, %c0_77, %c0_78] : memref<9x8x8xf32, #tpu.memory_space<vmem>>, vector<1x8x8xf32>
    %106 = vector.shape_cast %105 : vector<1x8x8xf32> to vector<8x8xf32>
    %cst_79 = arith.constant dense<0.000000e+00> : vector<8x256xf32>
    %107 = tpu.matmul %106, %104, %cst_79 {dimension_numbers = #tpu.dot_dimension_numbers<[1], [0], [0], [1], [0, 0, 1, 1], [], []>} : vector<8x8xf32>, vector<8x256xf32>, vector<8x256xf32> -> vector<8x256xf32>
    %108 = arith.addf %99, %107 : vector<8x256xf32>
    %c1_i32_80 = arith.constant 1 : i32
    %109 = tpu.dynamic_rotate %82 by %c1_i32_80 dim 1 : vector<8x256xf32>, i32 -> vector<8x256xf32>
    %c3_81 = arith.constant 3 : index
    %c0_82 = arith.constant 0 : index
    %c0_83 = arith.constant 0 : index
    %110 = vector.load %arg7[%c3_81, %c0_82, %c0_83] : memref<9x1x256xf32, #tpu.memory_space<vmem>>, vector<1x1x256xf32>
    %111 = vector.shape_cast %110 : vector<1x1x256xf32> to vector<1x256xf32>
    %112 = vector.broadcast %111 : vector<1x256xf32> to vector<8x256xf32>
    %113 = arith.mulf %109, %112 : vector<8x256xf32>
    %c3_84 = arith.constant 3 : index
    %c0_85 = arith.constant 0 : index
    %c0_86 = arith.constant 0 : index
    %114 = vector.load %arg5[%c3_84, %c0_85, %c0_86] : memref<9x8x8xf32, #tpu.memory_space<vmem>>, vector<1x8x8xf32>
    %115 = vector.shape_cast %114 : vector<1x8x8xf32> to vector<8x8xf32>
    %cst_87 = arith.constant dense<0.000000e+00> : vector<8x256xf32>
    %116 = tpu.matmul %115, %113, %cst_87 {dimension_numbers = #tpu.dot_dimension_numbers<[1], [0], [0], [1], [0, 0, 1, 1], [], []>} : vector<8x8xf32>, vector<8x256xf32>, vector<8x256xf32> -> vector<8x256xf32>
    %117 = arith.addf %108, %116 : vector<8x256xf32>
    %c4_88 = arith.constant 4 : index
    %c0_89 = arith.constant 0 : index
    %c0_90 = arith.constant 0 : index
    %118 = vector.load %arg5[%c4_88, %c0_89, %c0_90] : memref<9x8x8xf32, #tpu.memory_space<vmem>>, vector<1x8x8xf32>
    %119 = vector.shape_cast %118 : vector<1x8x8xf32> to vector<8x8xf32>
    %cst_91 = arith.constant dense<0.000000e+00> : vector<8x256xf32>
    %120 = tpu.matmul %119, %82, %cst_91 {dimension_numbers = #tpu.dot_dimension_numbers<[1], [0], [0], [1], [0, 0, 1, 1], [], []>} : vector<8x8xf32>, vector<8x256xf32>, vector<8x256xf32> -> vector<8x256xf32>
    %121 = arith.addf %117, %120 : vector<8x256xf32>
    %c255_i32_92 = arith.constant 255 : i32
    %122 = tpu.dynamic_rotate %82 by %c255_i32_92 dim 1 : vector<8x256xf32>, i32 -> vector<8x256xf32>
    %c5_93 = arith.constant 5 : index
    %c0_94 = arith.constant 0 : index
    %c0_95 = arith.constant 0 : index
    %123 = vector.load %arg7[%c5_93, %c0_94, %c0_95] : memref<9x1x256xf32, #tpu.memory_space<vmem>>, vector<1x1x256xf32>
    %124 = vector.shape_cast %123 : vector<1x1x256xf32> to vector<1x256xf32>
    %125 = vector.broadcast %124 : vector<1x256xf32> to vector<8x256xf32>
    %126 = arith.mulf %122, %125 : vector<8x256xf32>
    %c5_96 = arith.constant 5 : index
    %c0_97 = arith.constant 0 : index
    %c0_98 = arith.constant 0 : index
    %127 = vector.load %arg5[%c5_96, %c0_97, %c0_98] : memref<9x8x8xf32, #tpu.memory_space<vmem>>, vector<1x8x8xf32>
    %128 = vector.shape_cast %127 : vector<1x8x8xf32> to vector<8x8xf32>
    %cst_99 = arith.constant dense<0.000000e+00> : vector<8x256xf32>
    %129 = tpu.matmul %128, %126, %cst_99 {dimension_numbers = #tpu.dot_dimension_numbers<[1], [0], [0], [1], [0, 0, 1, 1], [], []>} : vector<8x8xf32>, vector<8x256xf32>, vector<8x256xf32> -> vector<8x256xf32>
    %130 = arith.addf %121, %129 : vector<8x256xf32>
    %c241_i32_100 = arith.constant 241 : i32
    %131 = tpu.dynamic_rotate %82 by %c241_i32_100 dim 1 : vector<8x256xf32>, i32 -> vector<8x256xf32>
    %c6_101 = arith.constant 6 : index
    %c0_102 = arith.constant 0 : index
    %c0_103 = arith.constant 0 : index
    %132 = vector.load %arg7[%c6_101, %c0_102, %c0_103] : memref<9x1x256xf32, #tpu.memory_space<vmem>>, vector<1x1x256xf32>
    %133 = vector.shape_cast %132 : vector<1x1x256xf32> to vector<1x256xf32>
    %134 = vector.broadcast %133 : vector<1x256xf32> to vector<8x256xf32>
    %135 = arith.mulf %131, %134 : vector<8x256xf32>
    %c6_104 = arith.constant 6 : index
    %c0_105 = arith.constant 0 : index
    %c0_106 = arith.constant 0 : index
    %136 = vector.load %arg5[%c6_104, %c0_105, %c0_106] : memref<9x8x8xf32, #tpu.memory_space<vmem>>, vector<1x8x8xf32>
    %137 = vector.shape_cast %136 : vector<1x8x8xf32> to vector<8x8xf32>
    %cst_107 = arith.constant dense<0.000000e+00> : vector<8x256xf32>
    %138 = tpu.matmul %137, %135, %cst_107 {dimension_numbers = #tpu.dot_dimension_numbers<[1], [0], [0], [1], [0, 0, 1, 1], [], []>} : vector<8x8xf32>, vector<8x256xf32>, vector<8x256xf32> -> vector<8x256xf32>
    %139 = arith.addf %130, %138 : vector<8x256xf32>
    %c240_i32_108 = arith.constant 240 : i32
    %140 = tpu.dynamic_rotate %82 by %c240_i32_108 dim 1 : vector<8x256xf32>, i32 -> vector<8x256xf32>
    %c7_109 = arith.constant 7 : index
    %c0_110 = arith.constant 0 : index
    %c0_111 = arith.constant 0 : index
    %141 = vector.load %arg7[%c7_109, %c0_110, %c0_111] : memref<9x1x256xf32, #tpu.memory_space<vmem>>, vector<1x1x256xf32>
    %142 = vector.shape_cast %141 : vector<1x1x256xf32> to vector<1x256xf32>
    %143 = vector.broadcast %142 : vector<1x256xf32> to vector<8x256xf32>
    %144 = arith.mulf %140, %143 : vector<8x256xf32>
    %c7_112 = arith.constant 7 : index
    %c0_113 = arith.constant 0 : index
    %c0_114 = arith.constant 0 : index
    %145 = vector.load %arg5[%c7_112, %c0_113, %c0_114] : memref<9x8x8xf32, #tpu.memory_space<vmem>>, vector<1x8x8xf32>
    %146 = vector.shape_cast %145 : vector<1x8x8xf32> to vector<8x8xf32>
    %cst_115 = arith.constant dense<0.000000e+00> : vector<8x256xf32>
    %147 = tpu.matmul %146, %144, %cst_115 {dimension_numbers = #tpu.dot_dimension_numbers<[1], [0], [0], [1], [0, 0, 1, 1], [], []>} : vector<8x8xf32>, vector<8x256xf32>, vector<8x256xf32> -> vector<8x256xf32>
    %148 = arith.addf %139, %147 : vector<8x256xf32>
    %c239_i32_116 = arith.constant 239 : i32
    %149 = tpu.dynamic_rotate %82 by %c239_i32_116 dim 1 : vector<8x256xf32>, i32 -> vector<8x256xf32>
    %c8_117 = arith.constant 8 : index
    %c0_118 = arith.constant 0 : index
    %c0_119 = arith.constant 0 : index
    %150 = vector.load %arg7[%c8_117, %c0_118, %c0_119] : memref<9x1x256xf32, #tpu.memory_space<vmem>>, vector<1x1x256xf32>
    %151 = vector.shape_cast %150 : vector<1x1x256xf32> to vector<1x256xf32>
    %152 = vector.broadcast %151 : vector<1x256xf32> to vector<8x256xf32>
    %153 = arith.mulf %149, %152 : vector<8x256xf32>
    %c8_120 = arith.constant 8 : index
    %c0_121 = arith.constant 0 : index
    %c0_122 = arith.constant 0 : index
    %154 = vector.load %arg5[%c8_120, %c0_121, %c0_122] : memref<9x8x8xf32, #tpu.memory_space<vmem>>, vector<1x8x8xf32>
    %155 = vector.shape_cast %154 : vector<1x8x8xf32> to vector<8x8xf32>
    %cst_123 = arith.constant dense<0.000000e+00> : vector<8x256xf32>
    %156 = tpu.matmul %155, %153, %cst_123 {dimension_numbers = #tpu.dot_dimension_numbers<[1], [0], [0], [1], [0, 0, 1, 1], [], []>} : vector<8x8xf32>, vector<8x256xf32>, vector<8x256xf32> -> vector<8x256xf32>
    %157 = arith.addf %148, %156 : vector<8x256xf32>
    %c0_124 = arith.constant 0 : index
    %c0_125 = arith.constant 0 : index
    %158 = vector.load %arg6[%c0_124, %c0_125] : memref<8x1xf32, #tpu.memory_space<vmem>>, vector<8x1xf32>
    %159 = vector.broadcast %158 : vector<8x1xf32> to vector<8x256xf32>
    %160 = arith.addf %157, %159 : vector<8x256xf32>
    %cst_126 = arith.constant 1.000000e-01 : f32
    %161 = vector.broadcast %cst_126 : f32 to vector<8x256xf32>
    %162 = arith.mulf %161, %160 : vector<8x256xf32>
    %163 = arith.maximumf %160, %162 : vector<8x256xf32>
    %c0_127 = arith.constant 0 : index
    %c0_128 = arith.constant 0 : index
    %c0_129 = arith.constant 0 : index
    %164 = vector.load %arg8[%c0_127, %c0_128, %c0_129] : memref<1x8x256xf32, #tpu.memory_space<vmem>>, vector<1x8x256xf32>
    %165 = vector.shape_cast %164 : vector<1x8x256xf32> to vector<8x256xf32>
    %166 = vector.shape_cast %163 : vector<8x256xf32> to vector<1x8x256xf32>
    tpu.vector_store %arg8[%c0_127, %c0_128, %c0_129], %166 {strides = array<i32>} : memref<1x8x256xf32, #tpu.memory_space<vmem>>, vector<1x8x256xf32>,
    return
  }
  func.func @transform_0(%arg0: i32) -> (i32, i32, i32) {
    %c0_i32 = arith.constant 0 : i32
    %c0_i32_0 = arith.constant 0 : i32
    %c0_i32_1 = arith.constant 0 : i32
    return %arg0, %c0_i32, %c0_i32_0 : i32, i32, i32
  }
  func.func @transform_1(%arg0: i32) -> (i32, i32, i32) {
    %c0_i32 = arith.constant 0 : i32
    %c0_i32_0 = arith.constant 0 : i32
    %c0_i32_1 = arith.constant 0 : i32
    %c0_i32_2 = arith.constant 0 : i32
    return %c0_i32, %c0_i32_0, %c0_i32_1 : i32, i32, i32
  }
  func.func @transform_2(%arg0: i32) -> (i32, i32) {
    %c0_i32 = arith.constant 0 : i32
    %c0_i32_0 = arith.constant 0 : i32
    %c0_i32_1 = arith.constant 0 : i32
    return %c0_i32, %c0_i32_0 : i32, i32
  }
  func.func @transform_3(%arg0: i32) -> (i32, i32, i32) {
    %c0_i32 = arith.constant 0 : i32
    %c0_i32_0 = arith.constant 0 : i32
    %c0_i32_1 = arith.constant 0 : i32
    %c0_i32_2 = arith.constant 0 : i32
    return %c0_i32, %c0_i32_0, %c0_i32_1 : i32, i32, i32
  }
  func.func @transform_4(%arg0: i32) -> (i32, i32, i32) {
    %c0_i32 = arith.constant 0 : i32
    %c0_i32_0 = arith.constant 0 : i32
    %c0_i32_1 = arith.constant 0 : i32
    %c0_i32_2 = arith.constant 0 : i32
    return %c0_i32, %c0_i32_0, %c0_i32_1 : i32, i32, i32
  }
  func.func @transform_5(%arg0: i32) -> (i32, i32) {
    %c0_i32 = arith.constant 0 : i32
    %c0_i32_0 = arith.constant 0 : i32
    %c0_i32_1 = arith.constant 0 : i32
    return %c0_i32, %c0_i32_0 : i32, i32
  }
  func.func @transform_6(%arg0: i32) -> (i32, i32, i32) {
    %c0_i32 = arith.constant 0 : i32
    %c0_i32_0 = arith.constant 0 : i32
    %c0_i32_1 = arith.constant 0 : i32
    %c0_i32_2 = arith.constant 0 : i32
    return %c0_i32, %c0_i32_0, %c0_i32_1 : i32, i32, i32
  }
  func.func @transform_7(%arg0: i32) -> (i32, i32, i32) {
    %c0_i32 = arith.constant 0 : i32
    %c0_i32_0 = arith.constant 0 : i32
    %c0_i32_1 = arith.constant 0 : i32
    return %arg0, %c0_i32, %c0_i32_0 : i32, i32, i32
  }
}

</mosaic_0001>

<bundles_post_ra>
// kernel: tpu_custom_call.1
= control target key start
LH: loop header
LB: loop body
LE: loop exit
PB: predicated region body
PF: predicated region fallthrough
CT: control target
= control target key end

     0   :  { %12 = vsyncpa [#allocation3], 0  ;;  %s2855_s0 = inlined_call_operand.vmem [shape: f32[2,4,256], index: 0, kind: input, shape index: {}]   ;;  %s2856_s1 = inlined_call_operand.vmem [shape: f32[9,8,4], index: 1, kind: input, shape index: {}]   ;;  %s2857_s2 = inlined_call_operand.vmem [shape: f32[8,1], index: 2, kind: input, shape index: {}]   ;;  %s2858_s3 = inlined_call_operand.vmem [shape: f32[9,1,256], index: 3, kind: input, shape index: {}]   ;;  %s2859_s4 = inlined_call_operand.vmem [shape: f32[9,8,8], index: 4, kind: input, shape index: {}]   ;;  %s2860_s5 = inlined_call_operand.vmem [shape: f32[8,1], index: 5, kind: input, shape index: {}]   ;;  %s2861_s6 = inlined_call_operand.vmem [shape: f32[9,1,256], index: 6, kind: input, shape index: {}]   ;;  %s2862_s7 = inlined_call_operand.hbm [shape: f32[2,8,256], index: 7, kind: output, shape index: {}]  }
   0x1   :  { %14 = vsyncpa [#allocation3 + $0x1], 0  ;;  %s2418_s24 = smov 0   ;;  %s2420_s25 = smov 0  }
   0x2   :  { %s2422_s26 = smov 0   ;;  %s2424_s27 = smov 0  }
   0x3 LB: > { %s2439_s28 = sadd.s32 4294967295, %s2365_s27   ;;  %s2174_s29 = sadd.s32 4294967294, %s2365_s27   ;;  %s2365_s27 = sphi %s2424_s27, %s2868_s27   ;;  %s2361_s26 = sphi %s2422_s26, %s2867_s26   ;;  %s2357_s25 = sphi %s2420_s25, %s2866_s25   ;;  %s2353_s24 = sphi %s2418_s24, %s2865_s24  }
   0x4   : > { %s2443_s30 = sadd.s32 1, %s2365_s27   ;;  %s179_s8 = sadd.s32 1, %s2361_s26 }
   0x5   : > { %s176_s9 = ssub.s32 %s2365_s27, %s2443_s30  ;;  %p189_p0 = scmp.ne.s32.totalorder %s2361_s26, %s2357_s25 }
   0x6   : > { %p177_p1 = scmp.eq.s32.totalorder %s176_s9, 0  ;;  %p190_p2 = scmp.eq.s32.totalorder %s2439_s28, 1 }
   0x7   : > { %p195_p3 = scmp.ne.s32.totalorder %s2357_s25, %s2353_s24  ;;  %p196_p4 = scmp.eq.s32.totalorder %s2174_s29, 1 }
   0x8   : > { %s2454_s10 = scalar_select %p177_p1, %s2361_s26, %s179_s8  }
   0x9   : > { %p2456_p5 = por %p190_p2, %p189_p0  ;;  %p2460_p6 = por %p196_p4, %p195_p3 }
   0xa   : > { %p2177_p7 = scmp.ge.s32.totalorder %s2365_s27, 1  ;;  %p240_p8 = scmp.lt.s32.totalorder %s2365_s27, 3 }
   0xc   : > { %p241_p9 = pnand %p2177_p7, %p240_p8 }
   0xd   : > { %p272_p10 = scmp.lt.s32.totalorder (!%p241_p9), %s2439_s28, 1  ;;  %s2368_s18 = smov (!%p241_p9), 17  }
   0xe   : > { %244 = sbr.rel (%p241_p9) target bundleno = 741 (0x2e5), region = 48  ;;  %s2369_s19 = smov (!%p241_p9), 16  }
   0xf   : > { %s2370_s20 = smov (!%p241_p9), 15   ;;  %s2371_s21 = smov (!%p241_p9), 1  }
  0x10   : > { %s2372_s22 = smov (!%p241_p9), 127   ;;  %s2373_s23 = smov (!%p241_p9), 113  }
  0x11   : > { %s2375_s29 = smov (!%p241_p9), 112   ;;  %s2376_s8 = smov (!%p241_p9), 111  }
  0x12   : > { %s269_s9 = sand.u32 (!%p241_p9), 1, %s2357_s25  }
  0x13   : > { %s273_s13 = scalar_select %p272_p10, %s2439_s28, 1  ;;  %v2367_v1 = vmov 0.0   ;;  %v2374_v3 = vmov 0   ;;  %v1209_v4 = vld [vmem:[%s2857_s2] sm:$0xff]  ;;  %v285_v5 = vlaneseq  ;;  %vm333_vm1 = vcmask 1043456   ;;  %v2182_v40 = vld [vmem:[%s2856_s1 + $0x8] sm:$0xff] }
  0x14   : > { %404 = vmatprep.mubr.f32.mxu0 %v2367_v1  ;;  %484 = vmatprep.mubr.f32.mxu1 %v2367_v1  ;;  %v290_v10 = vld [vmem:[%s2858_s3] sm:$0x3]  ;;  %v2181_v15 = vld [vmem:[%s2858_s3 + $0x2] sm:$0x3]  ;;  %v2189_v20 = vld [vmem:[%s2858_s3 + $0x4] sm:$0x3] }
  0x15   : > { %s2252_s14 = sshll.u32 %s273_s13, 3  ;;  %2303 = vset.pattern.permute.xlu0 %v2374_v3  ;;  %v293_v6 = vshrl.u32 %v285_v5, 7  ;;  %v2514_v7 = vand.u32 127, %v285_v5  ;;  %v2194_v25 = vld [vmem:[%s2858_s3 + $0x6] sm:$0x3]  ;;  %vm329_vm5 = vcmask 31744  }
  0x16   : > { %s276_s17 = scalar_lea.vmem %s2855_s0, %s2252_s14  ;;  %v304_v26 = vld [vmem:[%s2856_s1] sm:$0xff]  ;;  %v2203_v39 = vld [vmem:[%s2858_s3 + $0xa] sm:$0x3]  ;;  %v2208_v51 = vld [vmem:[%s2858_s3 + $0xc] sm:$0x3]  ;;  %vm1265_vm10 = vcmask 64512  }
  0x17   : > { %v2471_v0 = vld [vmem:[%s276_s17] sm:$0xff]  ;;  %v2516_v8 = vsub.s32 0, %v293_v6  ;;  %v2518_v9 = vsub.s32 1, %v293_v6  ;;  %vm287_vm0 = vcmp.lt.s32.totalorder %v2514_v7, 17  ;;  %vm495_vm2 = vcmp.lt.s32.totalorder %v2514_v7, 15  ;;  %v2190_v52 = vld [vmem:[%s2856_s1 + $0x10] sm:$0xff] }
  0x18   : > { %281 = vrot.lane.b32.xlu1 %v2471_v0, %s2368_s18  ;;  %305 = vrot.lane.b32.xlu0 %v2471_v0, %s2369_s19  ;;  %v2480_v2 = vcombine.high %v2471_v0, %v2471_v0  ;;  %vm309_vm3 = vcmp.lt.s32.totalorder %v2514_v7, 16  ;;  %vm601_vm4 = vcmp.lt.s32.totalorder %v2514_v7, 1  ;;  %vm789_vm6 = vcmp.lt.s32.totalorder %v2514_v7, 127  ;;  %v2195_v53 = vld [vmem:[%s2856_s1 + $0x18] sm:$0xff]  ;;  %v2213_v62 = vld [vmem:[%s2858_s3 + $0xe] sm:$0x3] }
  0x19   : > { %v295_v13 = vrot.slane %v290_v10, %v2516_v8  ;;  %v299_v14 = vrot.slane %v290_v10, %v2518_v9  ;;  %v318_v23 = vrot.slane %v2181_v15, %v2516_v8  ;;  %v322_v24 = vrot.slane %v2181_v15, %v2518_v9  ;;  %v2199_v63 = vld [vmem:[%s2856_s1 + $0x20] sm:$0xff]  ;;  %s2178_s13 = sshll.u32 %s269_s9, 4  ;;  %s2253_s14 = sshll.u32 %s2439_s28, 8 }
  0x1a   : > { %v504_v27 = vrot.slane %v2189_v20, %v2516_v8  ;;  %v508_v28 = vrot.slane %v2189_v20, %v2518_v9  ;;  %v610_v34 = vrot.slane %v2194_v25, %v2516_v8  ;;  %v614_v38 = vrot.slane %v2194_v25, %v2518_v9  ;;  %s271_s15 = scalar_lea.vmem [#allocation2], %s2178_s13 }
  0x1b   : > { %v798_v47 = vrot.slane %v2203_v39, %v2516_v8  ;;  %v802_v50 = vrot.slane %v2203_v39, %v2518_v9  ;;  %v904_v58 = vrot.slane %v2208_v51, %v2516_v8  ;;  %vm895_vm7 = vcmp.lt.s32.totalorder %v2514_v7, 113  ;;  %s2115_s16 = sshll.u32 %s271_s15, 4  ;;  %s2116_s16 = int_to_ptr.vmem [resolvable:$true] %s2115_s16 }
  0x1c   : > { %491 = vrot.lane.b32.xlu0 %v2471_v0, %s2370_s20  ;;  %283 = vrot.lane.b32.xlu1 %v2480_v2, %s2368_s18  ;;  %v908_v61 = vrot.slane %v2208_v51, %v2518_v9  ;;  %v1010_v6 = vrot.slane %v2213_v62, %v2516_v8  ;;  %vm1001_vm8 = vcmp.lt.s32.totalorder %v2514_v7, 112  ;;  %vm1107_vm9 = vcmp.lt.s32.totalorder %v2514_v7, 111 }
  0x20   : > { %493 = vrot.lane.b32.xlu1 %v2480_v2, %s2370_s20  ;;  %307 = vrot.lane.b32.xlu0 %v2480_v2, %s2369_s19 }
  0x24   : > { %599 = vrot.lane.b32.xlu1 %v2480_v2, %s2371_s21  ;;  %597 = vrot.lane.b32.xlu0 %v2471_v0, %s2371_s21 }
  0x28   : > { %787 = vrot.lane.b32.xlu1 %v2480_v2, %s2372_s22  ;;  %785 = vrot.lane.b32.xlu0 %v2471_v0, %s2372_s22 }
  0x2c   : > { %893 = vrot.lane.b32.xlu1 %v2480_v2, %s2373_s23  ;;  %891 = vrot.lane.b32.xlu0 %v2471_v0, %s2373_s23 }
  0x30   : > { %999 = vrot.lane.b32.xlu1 %v2480_v2, %s2375_s29  ;;  %997 = vrot.lane.b32.xlu0 %v2471_v0, %s2375_s29 }
  0x34   : > { %1105 = vrot.lane.b32.xlu1 %v2480_v2, %s2376_s8  ;;  %1103 = vrot.lane.b32.xlu0 %v2471_v0, %s2376_s8 }
  0x38   : > { %1212 = vperm.xlu0 %2303, %v1209_v4  }
  0x8a   : > { %v282_v11 = vpop.permute.xlu1 %281  ;;  %v306_v12 = vpop.permute.xlu0 %305 }
  0x8e   : > { %v492_v16 = vpop.permute.xlu0 %491  ;;  %v284_v17 = vpop.permute.xlu1 %283 }
  0x8f   : > { %v288_v18 = vsel %vm287_vm0, %v282_v11, %v284_v17  ;;  %v289_v19 = vsel %vm287_vm0, %v284_v17, %v282_v11 }
  0x90   : > { %v302_v21 = vmul.f32 %v295_v13, %v289_v19  ;;  %v303_v22 = vmul.f32 %v299_v14, %v288_v18  ;;  %v2209_v13 = vld [vmem:[%s2856_s1 + $0x30] sm:$0xff] }
  0x91   : > { %v2218_v14 = vld [vmem:[%s2858_s3 + $0x10] sm:$0x3] }
  0x92   : > { %2186 = vmatprep.subr.msk.mxu1 %vm333_vm1, %v303_v22  ;;  %v494_v29 = vpop.permute.xlu1 %493  ;;  %v308_v30 = vpop.permute.xlu0 %307  ;;  %v1120_v22 = vrot.slane %v2218_v14, %v2518_v9 }
  0x93   : > { %v496_v31 = vsel %vm495_vm2, %v492_v16, %v494_v29  ;;  %v310_v32 = vsel %vm309_vm3, %v306_v12, %v308_v30  ;;  %v311_v33 = vsel %vm309_vm3, %v308_v30, %v306_v12  ;;  %2187 = vmatpush1.msk.msra.mxu1 %vm333_vm1, %v302_v21  ;;  %v497_v35 = vsel %vm495_vm2, %v494_v29, %v492_v16  ;;  %v2219_v30 = vld [vmem:[%s2856_s1 + $0x40] sm:$0xff] }
  0x94   : > { %v325_v36 = vmul.f32 %v318_v23, %v311_v33  ;;  %v326_v37 = vmul.f32 %v322_v24, %v310_v32  ;;  %2188 = vmatmul.mubr.msk.f32.vlgmr.msra.gmra.mxu1 %vm329_vm5, %v304_v26  ;;  %v512_v41 = vmul.f32 %v508_v28, %v496_v31  ;;  %v511_v44 = vmul.f32 %v504_v27, %v497_v35  ;;  %v2214_v23 = vld [vmem:[%s2856_s1 + $0x38] sm:$0xff] }
  0x95   : > { %694 = vmatprep.mubr.f32.mxu1 %v2367_v1  ;;  %v1014_v12 = vrot.slane %v2213_v62, %v2518_v9  ;;  %v1116_v21 = vrot.slane %v2218_v14, %v2516_v8 }
  0x96   : > { %v600_v42 = vpop.permute.xlu1 %599  ;;  %2183 = vmatprep.subr.msk.mxu0 %vm333_vm1, %v326_v37  ;;  %v598_v43 = vpop.permute.xlu0 %597 }
  0x97   : > { %v602_v45 = vsel %vm601_vm4, %v598_v43, %v600_v42  ;;  %v603_v46 = vsel %vm601_vm4, %v600_v42, %v598_v43  ;;  %2184 = vmatpush1.msk.msra.mxu0 %vm333_vm1, %v325_v36 }
  0x98   : > { %v617_v48 = vmul.f32 %v610_v34, %v603_v46  ;;  %v618_v49 = vmul.f32 %v614_v38, %v602_v45  ;;  %2185 = vmatmul.mubr.msk.f32.vlgmr.msra.gmra.mxu0 %vm329_vm5, %v2182_v40  ;;  %2191 = vmatprep.subr.msk.mxu0 %vm333_vm1, %v512_v41 }
  0x99   : > { %2192 = vmatpush1.msk.msra.mxu0 %vm333_vm1, %v511_v44  ;;  %588 = vmatprep.mubr.f32.mxu0 %v2367_v1 }
  0x9a   : > { %v788_v54 = vpop.permute.xlu1 %787  ;;  %2196 = vmatprep.subr.msk.mxu1 %vm333_vm1, %v618_v49  ;;  %v786_v55 = vpop.permute.xlu0 %785  ;;  %2200 = vmatprep.subr.msk.mxu0 %vm333_vm1, %v2480_v2  ;;  %v2204_v2 = vld [vmem:[%s2856_s1 + $0x28] sm:$0xff] }
  0x9b   : > { %v790_v56 = vsel %vm789_vm6, %v786_v55, %v788_v54  ;;  %v791_v57 = vsel %vm789_vm6, %v788_v54, %v786_v55  ;;  %2197 = vmatpush1.msk.msra.mxu1 %vm333_vm1, %v617_v48 }
  0x9c   : > { %v805_v59 = vmul.f32 %v798_v47, %v790_v56  ;;  %v806_v60 = vmul.f32 %v802_v50, %v791_v57  ;;  %2193 = vmatmul.mubr.msk.f32.vlgmr.msra.gmra.mxu0 %vm329_vm5, %v2190_v52  ;;  %2198 = vmatmul.mubr.msk.f32.vlgmr.msra.gmra.mxu1 %vm329_vm5, %v2195_v53 }
  0x9d   : > { %2201 = vmatpush1.msk.msra.mxu0 %vm333_vm1, %v2471_v0  ;;  %776 = vmatprep.mubr.f32.mxu0 %v2367_v1 }
  0x9e   : > { %v894_v3 = vpop.permute.xlu1 %893  ;;  %2205 = vmatprep.subr.msk.mxu1 %vm333_vm1, %v806_v60  ;;  %v892_v4 = vpop.permute.xlu0 %891  ;;  %882 = vmatprep.mubr.f32.mxu1 %v2367_v1 }
  0x9f   : > { %v896_v5 = vsel %vm895_vm7, %v892_v4, %v894_v3  ;;  %v897_v0 = vsel %vm895_vm7, %v894_v3, %v892_v4  ;;  %2206 = vmatpush1.msk.msra.mxu1 %vm333_vm1, %v805_v59 }
  0xa0   : > { %v911_v10 = vmul.f32 %v904_v58, %v896_v5  ;;  %v912_v11 = vmul.f32 %v908_v61, %v897_v0  ;;  %2202 = vmatmul.mubr.msk.f32.vlgmr.msra.gmra.mxu0 %vm329_vm5, %v2199_v63  ;;  %2207 = vmatmul.mubr.msk.f32.vlgmr.msra.gmra.mxu1 %vm329_vm5, %v2204_v2 }
  0xa1   : > { %988 = vmatprep.mubr.f32.mxu0 %v2367_v1  ;;  %1094 = vmatprep.mubr.f32.mxu1 %v2367_v1 }
  0xa2   : > { %v1000_v15 = vpop.permute.xlu1 %999  ;;  %2210 = vmatprep.subr.msk.mxu0 %vm333_vm1, %v912_v11  ;;  %v998_v16 = vpop.permute.xlu0 %997 }
  0xa3   : > { %v1002_v17 = vsel %vm1001_vm8, %v998_v16, %v1000_v15  ;;  %v1003_v18 = vsel %vm1001_vm8, %v1000_v15, %v998_v16  ;;  %2211 = vmatpush1.msk.msra.mxu0 %vm333_vm1, %v911_v10 }
  0xa4   : > { %v1017_v19 = vmul.f32 %v1010_v6, %v1002_v17  ;;  %v1018_v20 = vmul.f32 %v1014_v12, %v1003_v18  ;;  %2212 = vmatmul.mubr.msk.f32.vlgmr.msra.gmra.mxu0 %vm329_vm5, %v2209_v13  ;;  %v2086_v12 = vld [vmem:[%s2860_s5] sm:$0xff] }
  0xa5   : > { %1200 = vmatprep.mubr.f32.mxu0 %v2367_v1  ;;  %v2223_v13 = vld [vmem:[%s2861_s6 + $0x2] sm:$0x3]  ;;  %v1227_v18 = vld [vmem:[%s2861_s6] sm:$0x3] }
  0xa6   : > { %v1106_v24 = vpop.permute.xlu1 %1105  ;;  %2215 = vmatprep.subr.msk.mxu1 %vm333_vm1, %v1018_v20  ;;  %v1104_v25 = vpop.permute.xlu0 %1103  ;;  %v1254_v16 = vrot.slane %v2223_v13, %v2516_v8  ;;  %v1258_v17 = vrot.slane %v2223_v13, %v2518_v9 }
  0xa7   : > { %v1108_v26 = vsel %vm1107_vm9, %v1104_v25, %v1106_v24  ;;  %v1109_v27 = vsel %vm1107_vm9, %v1106_v24, %v1104_v25  ;;  %2216 = vmatpush1.msk.msra.mxu1 %vm333_vm1, %v1017_v19  ;;  %v1232_v25 = vrot.slane %v1227_v18, %v2516_v8 }
  0xa8   : > { %v1123_v28 = vmul.f32 %v1116_v21, %v1108_v26  ;;  %v1124_v29 = vmul.f32 %v1120_v22, %v1109_v27  ;;  %2217 = vmatmul.mubr.msk.f32.vlgmr.msra.gmra.mxu1 %vm329_vm5, %v2214_v23  ;;  %v1236_v26 = vrot.slane %v1227_v18, %v2518_v9  ;;  %v2227_v27 = vld [vmem:[%s2861_s6 + $0x4] sm:$0x3]  ;;  %v2239_v18 = vld [vmem:[%s2859_s4 + $0x30] sm:$0xff] }
  0xa9   : > { %1333 = vmatprep.mubr.f32.mxu1 %v2367_v1 }
  0xaa   : > { %2220 = vmatprep.subr.msk.mxu0 %vm333_vm1, %v1124_v29 }
  0xab   : > { %2221 = vmatpush1.msk.msra.mxu0 %vm333_vm1, %v1123_v28  ;;  %v2224_v28 = vld [vmem:[%s2859_s4 + $0x8] sm:$0xff] }
  0xac   : > { %2222 = vmatmul.mubr.msk.f32.vlgmr.msra.gmra.mxu0 %vm329_vm5, %v2219_v30 }
  0xad   : > { %1407 = vmatprep.mubr.f32.mxu0 %v2367_v1 }
  0xb3   : > { %v1213_v61 = vpop.permute.xlu0 %1212 }
 0x154   : > { %v486_v31 = vpop.f32.mrf.mxu1 }
 0x156   : > { %v488_v33 = vpop.f32.mrf.mxu1 }
 0x158   : > { %v406_v32 = vpop.f32.mrf.mxu0 }
 0x159   : > { %v487_v34 = vadd.f32 %v486_v31, %v406_v32 }
 0x15a   : > { %v408_v35 = vpop.f32.mrf.mxu0 }
 0x15b   : > { %v489_v36 = vadd.f32 %v488_v33, %v408_v35  ;;  %v1426_v35 = vrot.slane %v2227_v27, %v2516_v8 }
 0x15c   : > { %v590_v37 = vpop.f32.mrf.mxu0  ;;  %v696_v38 = vpop.f32.mrf.mxu1 }
 0x15d   : > { %v595_v39 = vadd.f32 %v590_v37, %v487_v34  ;;  %v2230_v37 = vld [vmem:[%s2861_s6 + $0x6] sm:$0x3] }
 0x15e   : > { %v592_v40 = vpop.f32.mrf.mxu0  ;;  %v698_v41 = vpop.f32.mrf.mxu1 }
 0x15f   : > { %v596_v42 = vadd.f32 %v592_v40, %v489_v36  ;;  %v701_v43 = vadd.f32 %v696_v38, %v595_v39  ;;  %v1430_v36 = vrot.slane %v2227_v27, %v2518_v9  ;;  %v1241_v38 = vld [vmem:[%s2859_s4] sm:$0xff] }
 0x160   : > { %v778_v44 = vpop.f32.mrf.mxu0  ;;  %v884_v45 = vpop.f32.mrf.mxu1 }
 0x161   : > { %v702_v46 = vadd.f32 %v698_v41, %v596_v42  ;;  %v783_v47 = vadd.f32 %v778_v44, %v701_v43 }
 0x162   : > { %v780_v48 = vpop.f32.mrf.mxu0  ;;  %v886_v51 = vpop.f32.mrf.mxu1 }
 0x163   : > { %v784_v49 = vadd.f32 %v780_v48, %v702_v46  ;;  %v889_v50 = vadd.f32 %v884_v45, %v783_v47  ;;  %v1525_v45 = vrot.slane %v2230_v37, %v2516_v8  ;;  %v1529_v46 = vrot.slane %v2230_v37, %v2518_v9  ;;  %v2235_v47 = vld [vmem:[%s2861_s6 + $0xa] sm:$0x3]  ;;  %v2228_v48 = vld [vmem:[%s2859_s4 + $0x10] sm:$0xff] }
 0x164   : > { %v990_v52 = vpop.f32.mrf.mxu0 }
 0x165   : > { %v890_v53 = vadd.f32 %v886_v51, %v784_v49  ;;  %v995_v54 = vadd.f32 %v990_v52, %v889_v50  ;;  %v1702_v52 = vrot.slane %v2235_v47, %v2516_v8 }
 0x166   : > { %v992_v55 = vpop.f32.mrf.mxu0 }
 0x167   : > { %v996_v58 = vadd.f32 %v992_v55, %v890_v53  ;;  %v1706_v55 = vrot.slane %v2235_v47, %v2518_v9 }
 0x168   : > { %v1096_v56 = vpop.f32.mrf.mxu1 }
 0x169   : > { %v1101_v59 = vadd.f32 %v1096_v56, %v995_v54  ;;  %v2238_v56 = vld [vmem:[%s2861_s6 + $0xc] sm:$0x3] }
 0x16a   : > { %v1098_v57 = vpop.f32.mrf.mxu1 }
 0x16b   : > { %v1102_v62 = vadd.f32 %v1098_v57, %v996_v58  ;;  %v2231_v57 = vld [vmem:[%s2859_s4 + $0x18] sm:$0xff]  ;;  %v2233_v58 = vld [vmem:[%s2859_s4 + $0x20] sm:$0xff] }
 0x16c   : > { %v1202_v60 = vpop.f32.mrf.mxu0 }
 0x16d   : > { %v1207_v63 = vadd.f32 %v1202_v60, %v1101_v59 }
 0x16e   : > { %v1204_v2 = vpop.f32.mrf.mxu0 }
 0x16f   : > { %v1208_v3 = vadd.f32 %v1204_v2, %v1102_v62  ;;  %v1215_v4 = vadd.f32 %v1213_v61, %v1207_v63  ;;  %v1801_v63 = vrot.slane %v2238_v56, %v2516_v8 }
 0x171   : > { %v1216_v5 = vadd.f32 %v1213_v61, %v1208_v3  ;;  %v1217_v0 = vmul.f32 0.1, %v1215_v4 }
 0x173   : > { %v1218_v6 = vmul.f32 0.1, %v1216_v5  ;;  %v2665_v10 = vmax.f32 %v1215_v4, %v1217_v0  ;;  %v1805_v4 = vrot.slane %v2238_v56, %v2518_v9  ;;  %v2236_v0 = vld [vmem:[%s2859_s4 + $0x28] sm:$0xff] }
 0x175   : > { %1221 = vrot.lane.b32.xlu0 %v2665_v10, %s2368_s18  ;;  %1242 = vrot.lane.b32.xlu1 %v2665_v10, %s2369_s19  ;;  %v2671_v11 = vmax.f32 %v1216_v5, %v1218_v6  ;;  %v2241_v5 = vld [vmem:[%s2861_s6 + $0xe] sm:$0x3] }
 0x179   : > { %1414 = vrot.lane.b32.xlu0 %v2665_v10, %s2370_s20  ;;  %1244 = vrot.lane.b32.xlu1 %v2671_v11, %s2369_s19  ;;  %s2113_s19 = scalar_lea.hbm %s2862_s7, %s2253_s14 }
 0x17d   : > { %1513 = vrot.lane.b32.xlu0 %v2665_v10, %s2371_s21  ;;  %1223 = vrot.lane.b32.xlu1 %v2671_v11, %s2368_s18 }
 0x181   : > { %1690 = vrot.lane.b32.xlu0 %v2665_v10, %s2372_s22  ;;  %1416 = vrot.lane.b32.xlu1 %v2671_v11, %s2370_s20  ;;  %s2101_s20 = scalar_lea.sflag [#allocation3], %s269_s9 }
 0x185   : > { %1789 = vrot.lane.b32.xlu0 %v2665_v10, %s2373_s23  ;;  %1515 = vrot.lane.b32.xlu1 %v2671_v11, %s2371_s21  ;;  %s2305_s21 = scalar_lea.vmem %s2116_s16, 256 }
 0x186   : > { %p2306_p11 = scmp.ne.s32.totalorder %s2116_s16, %s2305_s21 }
 0x188   : > { %p2307_p12 = pnand %p2306_p11, %p2456_p5 }
 0x189   : > { %1888 = vrot.lane.b32.xlu0 %v2665_v10, %s2375_s29  ;;  %1692 = vrot.lane.b32.xlu1 %v2671_v11, %s2372_s22  ;;  %s2377_s22 = smov [#allocation2]  }
 0x18a   : > { %p2308_p13 = pneg %p2307_p12  ;;  %s2309_s28 = sshll.u32 %s2377_s22, 4  ;;  %s2310_s28 = int_to_ptr.vmem [resolvable:$false] %s2309_s28 }
 0x18b   : > { %p2312_p0 = scmp.lt.s32.totalorder %s2116_s16, %s2310_s28 }
 0x18d   : > { %1987 = vrot.lane.b32.xlu0 %v2665_v10, %s2376_s8  ;;  %1791 = vrot.lane.b32.xlu1 %v2671_v11, %s2373_s23  ;;  %s2311_s23 = scalar_lea.vmem %s2310_s28, 512 }
 0x18e   : > { %p2313_p1 = scmp.lt.s32.totalorder %s2311_s23, %s2305_s21 }
 0x190   : > { %p2314_p2 = por %p2313_p1, %p2312_p0 }
 0x191   : > { %2089 = vperm.xlu0 %2303, %v2086_v12   ;;  %1890 = vrot.lane.b32.xlu1 %v2671_v11, %s2375_s29 }
 0x192   : > { %p2315_p3 = pnand %p2314_p2, %p2308_p13 }
 0x195   : > { %1989 = vrot.lane.b32.xlu1 %v2671_v11, %s2376_s8 }
 0x1e7   : > { %v1222_v14 = vpop.permute.xlu0 %1221  ;;  %v1243_v15 = vpop.permute.xlu1 %1242 }
 0x1eb   : > { %v1415_v19 = vpop.permute.xlu0 %1414  ;;  %v1245_v20 = vpop.permute.xlu1 %1244 }
 0x1ec   : > { %v1246_v21 = vsel %vm309_vm3, %v1243_v15, %v1245_v20  ;;  %v1247_v22 = vsel %vm309_vm3, %v1245_v20, %v1243_v15  ;;  %v1900_v15 = vrot.slane %v2241_v5, %v2516_v8 }
 0x1ed   : > { %v1261_v23 = vmul.f32 %v1254_v16, %v1247_v22  ;;  %v1262_v24 = vmul.f32 %v1258_v17, %v1246_v21  ;;  %v1904_v16 = vrot.slane %v2241_v5, %v2518_v9  ;;  %v2244_v17 = vld [vmem:[%s2861_s6 + $0x10] sm:$0x3] }
 0x1ef   : > { %v1514_v29 = vpop.permute.xlu0 %1513  ;;  %1299 = vmatprep.subr.mxu1 %v1262_v24  ;;  %v1224_v30 = vpop.permute.xlu1 %1223  ;;  %v1999_v24 = vrot.slane %v2244_v17, %v2516_v8 }
 0x1f0   : > { %v1225_v31 = vsel %vm287_vm0, %v1222_v14, %v1224_v30  ;;  %v1226_v32 = vsel %vm287_vm0, %v1224_v30, %v1222_v14  ;;  %1300 = vmatpush1.msra.mxu1 %v1261_v23 }
 0x1f1   : > { %v1239_v33 = vmul.f32 %v1232_v25, %v1226_v32  ;;  %v1240_v34 = vmul.f32 %v1236_v26, %v1225_v31  ;;  %2225 = vmatmul.mubr.msk.f32.vlgmr.msra.gmra.mxu1 %vm1265_vm10, %v2224_v28  ;;  %v2003_v25 = vrot.slane %v2244_v17, %v2518_v9  ;;  %v2242_v26 = vld [vmem:[%s2859_s4 + $0x38] sm:$0xff]  ;;  %v2245_v31 = vld [vmem:[%s2859_s4 + $0x40] sm:$0xff] }
 0x1f2   : > { %1504 = vmatprep.mubr.f32.mxu1 %v2367_v1 }
 0x1f3   : > { %1373 = vmatprep.subr.mxu0 %v1240_v34  ;;  %v1417_v39 = vpop.permute.xlu1 %1416  ;;  %v1691_v42 = vpop.permute.xlu0 %1690 }
 0x1f4   : > { %v1418_v40 = vsel %vm495_vm2, %v1415_v19, %v1417_v39  ;;  %v1419_v41 = vsel %vm495_vm2, %v1417_v39, %v1415_v19  ;;  %1374 = vmatpush1.msra.mxu0 %v1239_v33 }
 0x1f5   : > { %v1433_v43 = vmul.f32 %v1426_v35, %v1419_v41  ;;  %v1434_v44 = vmul.f32 %v1430_v36, %v1418_v40  ;;  %2226 = vmatmul.mubr.msk.f32.vlgmr.msra.gmra.mxu0 %vm1265_vm10, %v1241_v38 }
 0x1f6   : > { %1603 = vmatprep.mubr.f32.mxu0 %v2367_v1 }
 0x1f7   : > { %1470 = vmatprep.subr.mxu1 %v1434_v44  ;;  %v1516_v49 = vpop.permute.xlu1 %1515  ;;  %v1790_v59 = vpop.permute.xlu0 %1789 }
 0x1f8   : > { %v1517_v50 = vsel %vm601_vm4, %v1514_v29, %v1516_v49  ;;  %v1518_v51 = vsel %vm601_vm4, %v1516_v49, %v1514_v29  ;;  %1471 = vmatpush1.msra.mxu1 %v1433_v43 }
 0x1f9   : > { %v1532_v53 = vmul.f32 %v1525_v45, %v1518_v51  ;;  %v1533_v54 = vmul.f32 %v1529_v46, %v1517_v50  ;;  %1647 = vmatprep.subr.mxu1 %v2671_v11  ;;  %2229 = vmatmul.mubr.msk.f32.vlgmr.msra.gmra.mxu1 %vm1265_vm10, %v2228_v48 }
 0x1fa   : > { %1648 = vmatpush1.msra.mxu1 %v2665_v10  ;;  %1681 = vmatprep.mubr.f32.mxu1 %v2367_v1 }
 0x1fb   : > { %1569 = vmatprep.subr.mxu0 %v1533_v54  ;;  %v1693_v60 = vpop.permute.xlu1 %1692  ;;  %v1889_v12 = vpop.permute.xlu0 %1888 }
 0x1fc   : > { %v1694_v61 = vsel %vm789_vm6, %v1691_v42, %v1693_v60  ;;  %v1695_v62 = vsel %vm789_vm6, %v1693_v60, %v1691_v42  ;;  %1570 = vmatpush1.msra.mxu0 %v1532_v53 }
 0x1fd   : > { %v1709_v2 = vmul.f32 %v1702_v52, %v1694_v61  ;;  %v1710_v3 = vmul.f32 %v1706_v55, %v1695_v62  ;;  %2232 = vmatmul.mubr.msk.f32.vlgmr.msra.gmra.mxu0 %vm1265_vm10, %v2231_v57  ;;  %2234 = vmatmul.mubr.msk.f32.vlgmr.msra.gmra.mxu1 %vm1265_vm10, %v2233_v58 }
 0x1fe   : > { %1780 = vmatprep.mubr.f32.mxu0 %v2367_v1  ;;  %1879 = vmatprep.mubr.f32.mxu1 %v2367_v1 }
 0x1ff   : > { %1746 = vmatprep.subr.mxu0 %v1710_v3  ;;  %v1792_v6 = vpop.permute.xlu1 %1791  ;;  %v1988_v27 = vpop.permute.xlu0 %1987 }
 0x200   : > { %v1793_v10 = vsel %vm895_vm7, %v1790_v59, %v1792_v6  ;;  %v1794_v11 = vsel %vm895_vm7, %v1792_v6, %v1790_v59  ;;  %1747 = vmatpush1.msra.mxu0 %v1709_v2 }
 0x201   : > { %v1808_v13 = vmul.f32 %v1801_v63, %v1793_v10  ;;  %v1809_v14 = vmul.f32 %v1805_v4, %v1794_v11  ;;  %2237 = vmatmul.mubr.msk.f32.vlgmr.msra.gmra.mxu0 %vm1265_vm10, %v2236_v0 }
 0x202   : > { %1978 = vmatprep.mubr.f32.mxu0 %v2367_v1 }
 0x203   : > { %1845 = vmatprep.subr.mxu1 %v1809_v14  ;;  %v1891_v19 = vpop.permute.xlu1 %1890 }
 0x204   : > { %v1892_v20 = vsel %vm1001_vm8, %v1889_v12, %v1891_v19  ;;  %v1893_v21 = vsel %vm1001_vm8, %v1891_v19, %v1889_v12  ;;  %1846 = vmatpush1.msra.mxu1 %v1808_v13 }
 0x205   : > { %v1907_v22 = vmul.f32 %v1900_v15, %v1892_v20  ;;  %v1908_v23 = vmul.f32 %v1904_v16, %v1893_v21  ;;  %2240 = vmatmul.mubr.msk.f32.vlgmr.msra.gmra.mxu1 %vm1265_vm10, %v2239_v18 }
 0x206   : > { %2077 = vmatprep.mubr.f32.mxu1 %v2367_v1 }
 0x207   : > { %1944 = vmatprep.subr.mxu0 %v1908_v23  ;;  %v1990_v28 = vpop.permute.xlu1 %1989 }
 0x208   : > { %v1991_v29 = vsel %vm1107_vm9, %v1988_v27, %v1990_v28  ;;  %v1992_v30 = vsel %vm1107_vm9, %v1990_v28, %v1988_v27  ;;  %1945 = vmatpush1.msra.mxu0 %v1907_v22 }
 0x209   : > { %v2006_v8 = vmul.f32 %v1999_v24, %v1991_v29  ;;  %v2007_v9 = vmul.f32 %v2003_v25, %v1992_v30  ;;  %2243 = vmatmul.mubr.msk.f32.vlgmr.msra.gmra.mxu0 %vm1265_vm10, %v2242_v26 }
 0x20b   : > { %2043 = vmatprep.subr.mxu1 %v2007_v9 }
 0x20c   : > { %2044 = vmatpush1.msra.mxu1 %v2006_v8  ;;  %v2090_v62 = vpop.permute.xlu0 %2089 }
 0x20d   : > { %2246 = vmatmul.mubr.msk.f32.vlgmr.msra.gmra.mxu1 %vm1265_vm10, %v2245_v31 }
 0x2b1   : > { %v1335_v1 = vpop.f32.mrf.mxu1 }
 0x2b3   : > { %v1337_v32 = vpop.f32.mrf.mxu1 }
 0x2b5   : > { %v1409_v33 = vpop.f32.mrf.mxu0 }
 0x2b6   : > { %v1410_v34 = vadd.f32 %v1409_v33, %v1335_v1 }
 0x2b7   : > { %v1411_v35 = vpop.f32.mrf.mxu0 }
 0x2b8   : > { %v1412_v7 = vadd.f32 %v1411_v35, %v1337_v32 }
 0x2b9   : > { %v1506_v36 = vpop.f32.mrf.mxu1 }
 0x2ba   : > { %v1511_v37 = vadd.f32 %v1506_v36, %v1410_v34 }
 0x2bb   : > { %v1508_v38 = vpop.f32.mrf.mxu1 }
 0x2bc   : > { %v1512_v39 = vadd.f32 %v1508_v38, %v1412_v7 }
 0x2bd   : > { %v1605_v40 = vpop.f32.mrf.mxu0  ;;  %v1683_v41 = vpop.f32.mrf.mxu1 }
 0x2be   : > { %v1610_v42 = vadd.f32 %v1605_v40, %v1511_v37 }
 0x2bf   : > { %v1607_v43 = vpop.f32.mrf.mxu0  ;;  %v1685_v46 = vpop.f32.mrf.mxu1 }
 0x2c0   : > { %v1611_v44 = vadd.f32 %v1607_v43, %v1512_v39  ;;  %v1688_v45 = vadd.f32 %v1683_v41, %v1610_v42 }
 0x2c1   : > { %v1782_v47 = vpop.f32.mrf.mxu0 }
 0x2c2   : > { %v1689_v48 = vadd.f32 %v1685_v46, %v1611_v44  ;;  %v1787_v49 = vadd.f32 %v1782_v47, %v1688_v45 }
 0x2c3   : > { %v1784_v50 = vpop.f32.mrf.mxu0 }
 0x2c4   : > { %v1788_v52 = vadd.f32 %v1784_v50, %v1689_v48 }
 0x2c5   : > { %v1881_v51 = vpop.f32.mrf.mxu1 }
 0x2c6   : > { %v1886_v53 = vadd.f32 %v1881_v51, %v1787_v49 }
 0x2c7   : > { %v1883_v54 = vpop.f32.mrf.mxu1 }
 0x2c8   : > { %v1887_v57 = vadd.f32 %v1883_v54, %v1788_v52 }
 0x2c9   : > { %v1980_v55 = vpop.f32.mrf.mxu0 }
 0x2ca   : > { %v1985_v58 = vadd.f32 %v1980_v55, %v1886_v53 }
 0x2cb   : > { %v1982_v56 = vpop.f32.mrf.mxu0 }
 0x2cc   : > { %v1986_v60 = vadd.f32 %v1982_v56, %v1887_v57 }
 0x2cd   : > { %v2079_v59 = vpop.f32.mrf.mxu1 }
 0x2ce   : > { %v2084_v61 = vadd.f32 %v2079_v59, %v1985_v58 }
 0x2cf   : > { %v2081_v63 = vpop.f32.mrf.mxu1 }
 0x2d0   : > { %v2092_v2 = vadd.f32 %v2090_v62, %v2084_v61  ;;  %v2085_v3 = vadd.f32 %v2081_v63, %v1986_v60 }
 0x2d2   : > { %v2094_v4 = vmul.f32 0.1, %v2092_v2  ;;  %v2093_v5 = vadd.f32 %v2090_v62, %v2085_v3 }
 0x2d4   : > { %v2096_v0 = vmax.f32 %v2092_v2, %v2094_v4  ;;  %v2095_v6 = vmul.f32 0.1, %v2093_v5 }
 0x2d6   : > { %v2097_v10 = vmax.f32 %v2093_v5, %v2095_v6  ;;  %2098 = vst [vmem:[%s271_s15] sm:$0xff] %v2096_v0 }
 0x2d8   : > { %2099 = vst [vmem:[%s271_s15 + $0x8] sm:$0xff] %v2097_v10 }
 0x2d9   : > { %2318 = shalt.err (!%p2315_p3)
}
 0x2da   : > { %s2319_s29 = scalar_lea.hbm %s2113_s19, 256  ;;  %s2323_s13 = scalar_lea.hbm %s2862_s7, 512 }
 0x2db   : > { %p2320_p4 = scmp.ne.s32.totalorder %s2113_s19, %s2319_s29  ;;  %p2324_p9 = scmp.lt.s32.totalorder %s2113_s19, %s2862_s7 }
 0x2dc   : > { %p2325_p10 = scmp.lt.s32.totalorder %s2323_s13, %s2319_s29 }
 0x2dd   : > { %p2321_p7 = pnand %p2320_p4, %p2456_p5 }
 0x2de   : > { %p2326_p11 = por %p2325_p10, %p2324_p9 }
 0x2df   : > { %p2322_p8 = pneg %p2321_p7 }
 0x2e1   : > { %p2327_p12 = pnand %p2326_p11, %p2322_p8 }
 0x2e3   : > { %2330 = shalt.err (!%p2327_p12)
}
 0x2e4   : > { %2254 = dma.vmem_to_hbm [thread:$0]  (%p2456_p5), %s2116_s16, 256, %s2113_s19, %s2101_s20  }
 0x2e5 PF: > { %p2260_p13 = scmp.ge.s32.totalorder %s2365_s27, 2  ;;  %s2127_s17 = sand.u32 1, %s2353_s24  }
 0x2e6   : > { %s2128_s18 = scalar_lea.sflag [#allocation3], %s2127_s17 }
 0x2e7   : > { %p2257_p0 = pnand %p2260_p13, %p2460_p6 }
 0x2e9   : > { %p2258_p1 = pneg %p2257_p0 }
 0x2eb   : > { %2348 = dma.done.wait (%p2258_p1), %s2128_s18, 256  }
 0x2ec   : > { %2350 = vsyncadd (%p2258_p1), %s2128_s18, 4294967040  ;;  %p17_p2 = scmp.ge.s32.totalorder %s2443_s30, 4   ;;  %s2865_s24 = smov %s2357_s25 }
 0x2ed   : > { %s2866_s25 = smov %s2361_s26  ;;  %s2867_s26 = smov %s2454_s10 }
 0x2ee   : > { %s2868_s27 = smov %s2443_s30  ;;  %19 = sbr.rel (!%p17_p2) target bundleno = 3 (0x3), region = 113 }
 0x2f3   :  { %2133 = vsyncpa [#allocation3], 1 }
 0x2f4   :  { %2135 = vsyncpa [#allocation3 + $0x1], 1 }

</bundles_post_ra>
